<compile_context>
chip_gen: v7x
topology: tpu7x:2x2x1
jax: 0.10.0
libtpu: 0.0.40
codegen_flags: <defaults>
</compile_context>

<pallas_src>
import jax
import jax.numpy as jnp
from jax.experimental import pallas as pl
from jax.experimental.pallas import tpu as pltpu


def _mlp_predictor_kernel(hcat_t_ref, w1_ref, b1_ref, w2_ref, b2_ref, out_ref):
    """Fused 2-layer edge MLP, fully VMEM-resident, lane-dense along edges.

    hcat_t_ref: (2H, E)  concatenated [h_src; h_dst] edge features, transposed
    w1_ref:     (H, 2H)  W1 weight, native nn.Linear layout (out, in)
    b1_ref:     (H, 1)   W1 bias (column vector, broadcast along lanes)
    w2_ref:     (1, H)   W2 weight, native nn.Linear layout
    b2_ref:     (1, 1)   W2 bias
    out_ref:    (1, E)   per-edge score (row vector -> lane-dense stores)
    """
    # Single K = 2H MXU matmul covers both the src- and dst-feature halves.
    hidden = jnp.dot(w1_ref[...], hcat_t_ref[...],
                     preferred_element_type=jnp.float32)          # (H, E)
    hidden = jnp.maximum(hidden + b1_ref[...], 0.0)               # bias + ReLU (VPU)
    score = jnp.dot(w2_ref[...], hidden,
                    preferred_element_type=jnp.float32) + b2_ref[...]   # (1, E)
    out_ref[...] = score.astype(out_ref.dtype)


def mlp_predictor_scores(h, src, dst, params):
    """MLPPredictor.forward: one scalar score per edge of the (bidirected) graph."""
    # Edge-endpoint gather + feature concat (XLA), presented edge-lane-dense (2H, E).
    h_cat_t = jnp.concatenate([h[src], h[dst]], axis=1).T          # (2H, E)
    k, e = h_cat_t.shape                                           # k = 2H
    hdim = params["w1"].shape[0]                                   # H
    vmem = pltpu.MemorySpace.VMEM

    out = pl.pallas_call(
        _mlp_predictor_kernel,
        out_shape=jax.ShapeDtypeStruct((1, e), jnp.float32),
        in_specs=[
            pl.BlockSpec((k, e), lambda: (0, 0), memory_space=vmem),
            pl.BlockSpec((hdim, k), lambda: (0, 0), memory_space=vmem),
            pl.BlockSpec((hdim, 1), lambda: (0, 0), memory_space=vmem),
            pl.BlockSpec((1, hdim), lambda: (0, 0), memory_space=vmem),
            pl.BlockSpec((1, 1), lambda: (0, 0), memory_space=vmem),
        ],
        out_specs=pl.BlockSpec((1, e), lambda: (0, 0), memory_space=vmem),
        cost_estimate=pl.CostEstimate(
            flops=2 * e * k * hdim + 2 * e * hdim,
            transcendentals=0,
            bytes_accessed=4 * (e * k + hdim * k + 2 * hdim + 1 + e),
        ),
    )(h_cat_t, params["w1"], params["b1"], params["w2"], params["b2"])
    return out[0, :]  # .squeeze(1) -> shape (E,)


def _reference_scores(h, src, dst, params):
    """Pure-JAX reference mirroring the PyTorch module (nn.Linear: x @ W.T + b)."""
    h_cat = jnp.concatenate([h[src], h[dst]], axis=1)              # (E, 2H)
    hidden = jnp.maximum(h_cat @ params["w1"].T + params["b1"][:, 0], 0.0)
    return (hidden @ params["w2"].T + params["b2"][0, 0])[:, 0]


if __name__ == "__main__":
    N = 64        # number of nodes
    H_FEATS = 32  # h_feats (node embedding width fed to the predictor)

    # Deterministic bidirected graph (ring + two chord patterns), no self loops.
    src_list, dst_list = [], []
    for i in range(N):
        for d in (1, 3, 7):
            j = (i + d) % N
            src_list.append(i); dst_list.append(j)
            src_list.append(j); dst_list.append(i)   # dgl.to_bidirected equivalent
    src = jnp.array(src_list, dtype=jnp.int32)
    dst = jnp.array(dst_list, dtype=jnp.int32)       # E = 384 edges

    key = jax.random.PRNGKey(0)
    k_h, k1, k2, k3, k4 = jax.random.split(key, 5)

    h = jax.random.normal(k_h, (N, H_FEATS), dtype=jnp.float32)

    def lin_init(k, fan_out, fan_in):
        # Xavier-uniform-ish deterministic init, native nn.Linear layout (out, in).
        bound = (6.0 / (fan_in + fan_out)) ** 0.5
        return jax.random.uniform(k, (fan_out, fan_in), jnp.float32, -bound, bound)

    params = {
        "w1": lin_init(k1, H_FEATS, 2 * H_FEATS),                       # (H, 2H)
        "b1": jax.random.normal(k2, (H_FEATS, 1), jnp.float32) * 0.01,  # (H, 1)
        "w2": lin_init(k3, 1, H_FEATS),                                 # (1, H)
        "b2": jax.random.normal(k4, (1, 1), jnp.float32) * 0.01,        # (1, 1)
    }

    scores = mlp_predictor_scores(h, src, dst, params)
    scores = jax.block_until_ready(scores)

    ref = _reference_scores(h, src, dst, params)
    assert scores.shape == (src.shape[0],)
    assert jnp.allclose(scores, ref, atol=1e-4, rtol=1e-4), "mismatch vs reference"

    print("KERNEL_OK")
</pallas_src>

<mosaic_0001>
module attributes {stable_mosaic.version = 11 : i64} {
  func.func @_mlp_predictor_kernel(%arg0: memref<64x384xf32, #tpu.memory_space<vmem>>, %arg1: memref<32x64xf32, #tpu.memory_space<vmem>>, %arg2: memref<32x1xf32, #tpu.memory_space<vmem>>, %arg3: memref<1x32xf32, #tpu.memory_space<vmem>>, %arg4: memref<1x1xf32, #tpu.memory_space<vmem>>, %arg5: memref<1x384xf32, #tpu.memory_space<vmem>>) attributes {dimension_semantics = [], scalar_prefetch = 0 : i64, scratch_operands = 0 : i64, tpu.core_type = #tpu.core_type<tc>} {
    %c0 = arith.constant 0 : index
    %c0_0 = arith.constant 0 : index
    %0 = vector.load %arg1[%c0, %c0_0] : memref<32x64xf32, #tpu.memory_space<vmem>>, vector<32x64xf32>
    %c0_1 = arith.constant 0 : index
    %c0_2 = arith.constant 0 : index
    %1 = vector.load %arg0[%c0_1, %c0_2] : memref<64x384xf32, #tpu.memory_space<vmem>>, vector<64x384xf32>
    %cst = arith.constant dense<0.000000e+00> : vector<32x384xf32>
    %2 = tpu.matmul %0, %1, %cst {dimension_numbers = #tpu.dot_dimension_numbers<[1], [0], [0], [1], [0, 0, 1, 1], [], []>} : vector<32x64xf32>, vector<64x384xf32>, vector<32x384xf32> -> vector<32x384xf32>
    %c0_3 = arith.constant 0 : index
    %c0_4 = arith.constant 0 : index
    %3 = vector.load %arg2[%c0_3, %c0_4] : memref<32x1xf32, #tpu.memory_space<vmem>>, vector<32x1xf32>
    %4 = vector.broadcast %3 : vector<32x1xf32> to vector<32x384xf32>
    %5 = arith.addf %2, %4 : vector<32x384xf32>
    %cst_5 = arith.constant 0.000000e+00 : f32
    %6 = vector.broadcast %cst_5 : f32 to vector<32x384xf32>
    %7 = arith.maximumf %5, %6 : vector<32x384xf32>
    %c0_6 = arith.constant 0 : index
    %c0_7 = arith.constant 0 : index
    %8 = vector.load %arg3[%c0_6, %c0_7] : memref<1x32xf32, #tpu.memory_space<vmem>>, vector<1x32xf32>
    %cst_8 = arith.constant dense<0.000000e+00> : vector<1x384xf32>
    %9 = tpu.matmul %8, %7, %cst_8 {dimension_numbers = #tpu.dot_dimension_numbers<[1], [0], [0], [1], [0, 0, 1, 1], [], []>} : vector<1x32xf32>, vector<32x384xf32>, vector<1x384xf32> -> vector<1x384xf32>
    %c0_9 = arith.constant 0 : index
    %c0_10 = arith.constant 0 : index
    %10 = vector.load %arg4[%c0_9, %c0_10] : memref<1x1xf32, #tpu.memory_space<vmem>>, vector<1x1xf32>
    %11 = vector.broadcast %10 : vector<1x1xf32> to vector<1x384xf32>
    %12 = arith.addf %9, %11 : vector<1x384xf32>
    %c0_11 = arith.constant 0 : index
    %c0_12 = arith.constant 0 : index
    %13 = vector.load %arg5[%c0_11, %c0_12] : memref<1x384xf32, #tpu.memory_space<vmem>>, vector<1x384xf32>
    tpu.vector_store %arg5[%c0_11, %c0_12], %12 {strides = array<i32>} : memref<1x384xf32, #tpu.memory_space<vmem>>, vector<1x384xf32>,
    return
  }
}

</mosaic_0001>

<bundles_post_ra>
// kernel: tpu_custom_call.1
= control target key start
LH: loop header
LB: loop body
LE: loop exit
PB: predicated region body
PF: predicated region fallthrough
CT: control target
= control target key end

     0   :  { %s763_s0 = inlined_call_operand.hbm [shape: f32[64,384], index: 0, kind: input, shape index: {}]   ;;  %s764_s1 = inlined_call_operand.vmem [shape: f32[32,64], index: 1, kind: input, shape index: {}]   ;;  %s765_s2 = inlined_call_operand.vmem [shape: f32[32,1], index: 2, kind: input, shape index: {}]   ;;  %s766_s3 = inlined_call_operand.vmem [shape: f32[1,32], index: 3, kind: input, shape index: {}]   ;;  %s767_s4 = inlined_call_operand.<no memory space> [shape: f32[1,1], index: 4, kind: input, shape index: {}]   ;;  %s768_s5 = inlined_call_operand.hbm [shape: f32[1,384], index: 5, kind: output, shape index: {}]  }
   0x1   :  { %v10_v0 = vstv %s767_s4 }
   0x2   :  { %11 = vst [vmem:[#allocation2] sm:$0x1] %v10_v0 }
   0x3   :  { %12 = vsyncpa [#allocation4], 0 }
   0x4   :  { %13 = vsyncpa [#allocation5], 0  ;;  %s656_s20 = smov [#allocation3]   ;;  %s608_s24 = scalar_lea.hbm %s763_s0, 3072 }
   0x5   :  { %s19_s21 = sshll.u32 %s656_s20, 4  ;;  %p609_p0 = scmp.ne.s32.totalorder %s763_s0, %s608_s24  ;;  %s20_s21 = int_to_ptr.vmem [resolvable:$true] %s19_s21 }
   0x6   :  { %p612_p1 = scmp.lt.u32.totalorder %s608_s24, %s763_s0 }
   0x8   :  { %p614_p2 = pnand %p612_p1, %p609_p0 }
   0xa   :  { %617 = shalt.err (!%p614_p2)
}
   0xb   :  { %s618_s4 = scalar_lea.vmem %s20_s21, 3072  ;;  %p623_p4 = scmp.lt.s32.totalorder %s20_s21, %s20_s21 }
   0xc   :  { %p619_p3 = scmp.ne.s32.totalorder %s20_s21, %s618_s4  ;;  %p624_p5 = scmp.lt.s32.totalorder %s618_s4, %s618_s4 }
   0xe   :  { %p625_p6 = por %p624_p5, %p623_p4 }
  0x10   :  { %p626_p7 = pnand %p625_p6, %p619_p3 }
  0x12   :  { %629 = shalt.err (!%p626_p7)
}
  0x13   :  { %s657_s29 = smov 384   ;;  %s658_s30 = smov 24  }
  0x14   :  { %25 = dma.hbm_to_vmem [thread:$0]  %s763_s0, 3072, %s20_s21, [#allocation4], %s657_s29, %s657_s29, %s658_s30  }
  0x15   :  { %652 = dma.done.wait [#allocation4], 3072  }
  0x16   :  { %653 = vsyncadd [#allocation4], 4294964224  ;;  %v659_v1 = vmov 0.0   ;;  %v660_v2 = vmov 0   ;;  %v42_v3 = vld [vmem:[#allocation3 + $0x8] sm:$0xff]  ;;  %v45_v4 = vld [vmem:[#allocation3 + $0x20] sm:$0xff] }
  0x17   :  { %166 = vmatprep.mubr.f32.mxu0 %v659_v1  ;;  %606 = vset.pattern.permute.xlu0 %v660_v2  ;;  %v43_v5 = vld [vmem:[#allocation3 + $0x10] sm:$0xff]  ;;  %v551_v6 = vpack.c.bf16 %v45_v4, %v42_v3  ;;  %v46_v7 = vld [vmem:[#allocation3 + $0x28] sm:$0xff]  ;;  %v41_v8 = vld [vmem:[#allocation3] sm:$0xff]  ;;  %vm89_vm0 = vcmask 523264   ;;  %v661_v48 = vmov 0.0|0.0   ;;  %vm662_vm1 = vmmov 0  }
  0x18   :  { %607 = vset.pattern.permute.xlu1 %v660_v2  ;;  %v44_v9 = vld [vmem:[#allocation3 + $0x18] sm:$0xff]  ;;  %v567_v10 = vpack.c.bf16 %v46_v7, %v43_v5  ;;  %v51_v13 = vld [vmem:[#allocation3 + $0x50] sm:$0xff]  ;;  %v49_v14 = vld [vmem:[#allocation3 + $0x40] sm:$0xff]  ;;  %vm299_vm2 = vcmask 261120  }
  0x19   :  { %v553_v11 = vpack.c.bf16 %v44_v9, %v41_v8  ;;  %v48_v12 = vld [vmem:[#allocation3 + $0x38] sm:$0xff]  ;;  %552 = vmatprep.subr.bf16.mxu0 %v551_v6  ;;  %v47_v17 = vld [vmem:[#allocation3 + $0x30] sm:$0xff]  ;;  %v50_v18 = vld [vmem:[#allocation3 + $0x48] sm:$0xff] }
  0x1a   :  { %v555_v15 = vpack.c.bf16 %v51_v13, %v48_v12  ;;  %v52_v16 = vld [vmem:[#allocation3 + $0x58] sm:$0xff]  ;;  %568 = vmatprep.subr.bf16.mxu1 %v567_v10  ;;  %v557_v20 = vpack.c.bf16 %v50_v18, %v47_v17  ;;  %v54_v21 = vld [vmem:[#allocation3 + $0x68] sm:$0xff]  ;;  %v57_v22 = vld [vmem:[#allocation3 + $0x80] sm:$0xff] }
  0x1b   :  { %554 = vmatpush1.bf16.msra.mxu0 %v553_v11  ;;  %v571_v19 = vpack.c.bf16 %v52_v16, %v49_v14  ;;  %v55_v23 = vld [vmem:[#allocation3 + $0x70] sm:$0xff]  ;;  %570 = vmatpush3.bf16.msra.mxu1 %v567_v10  ;;  %v559_v24 = vpack.c.bf16 %v57_v22, %v54_v21  ;;  %v58_v25 = vld [vmem:[#allocation3 + $0x88] sm:$0xff]  ;;  %v53_v26 = vld [vmem:[#allocation3 + $0x60] sm:$0xff] }
  0x1c   :  { %556 = vmatprep.subr.bf16.mxu0 %v555_v15  ;;  %v56_v27 = vld [vmem:[#allocation3 + $0x78] sm:$0xff]  ;;  %v575_v28 = vpack.c.bf16 %v58_v25, %v55_v23  ;;  %v63_v30 = vld [vmem:[#allocation3 + $0xb0] sm:$0xff]  ;;  %v61_v31 = vld [vmem:[#allocation3 + $0xa0] sm:$0xff] }
  0x1d   :  { %572 = vmatprep.subr.bf16.mxu1 %v571_v19  ;;  %v60_v29 = vld [vmem:[#allocation3 + $0x98] sm:$0xff]  ;;  %v561_v33 = vpack.c.bf16 %v56_v27, %v53_v26  ;;  %v59_v36 = vld [vmem:[#allocation3 + $0x90] sm:$0xff]  ;;  %v62_v37 = vld [vmem:[#allocation3 + $0xa8] sm:$0xff] }
  0x1e   :  { %v64_v32 = vld [vmem:[#allocation3 + $0xb8] sm:$0xff]  ;;  %v563_v35 = vpack.c.bf16 %v63_v30, %v60_v29  ;;  %v67_v40 = vld [vmem:[%s765_s2 + $0x10] sm:$0xff]  ;;  %v565_v41 = vpack.c.bf16 %v62_v37, %v59_v36  ;;  %v66_v42 = vld [vmem:[%s765_s2 + $0x8] sm:$0xff]  ;;  %v663_v36 = vmov 1966171168  }
  0x1f   :  { %558 = vmatpush1.bf16.msra.mxu0 %v557_v20  ;;  %v37_v34 = vld [vmem:[%s764_s1] sm:$0xff]  ;;  %574 = vmatpush3.bf16.msra.mxu1 %v571_v19  ;;  %v579_v39 = vpack.c.bf16 %v64_v32, %v61_v31  ;;  %v68_v43 = vld [vmem:[%s765_s2 + $0x18] sm:$0xff]  ;;  %v38_v45 = vld [vmem:[%s764_s1 + $0x8] sm:$0xff]  ;;  %v295_v32 = vlaneseq  ;;  %v449_v37 = vunpack.c.l.s4 %v663_v36 }
  0x20   :  { %560 = vmatprep.subr.bf16.mxu0 %v559_v24  ;;  %v65_v38 = vld [vmem:[%s765_s2] sm:$0xff]  ;;  %576 = vmatprep.subr.bf16.mxu1 %v575_v28  ;;  %v39_v46 = vld [vmem:[%s764_s1 + $0x10] sm:$0xff]  ;;  %v40_v47 = vld [vmem:[%s764_s1 + $0x18] sm:$0xff] }
  0x21   :  { %534 = vmatprep.mubr.msk.f32.mxu1 %vm89_vm0, %v37_v34  ;;  %71 = vperm.xlu0 %606, %v65_v38   ;;  %v289_v44 = vld [vmem:[#allocation2] sm:$0x1]  ;;  %vm473_vm3 = vcmp.lt.s32.totalorder %v295_v32, 384 }
  0x22   :  { %81 = vperm.xlu1 %607, %v67_v40   ;;  %v288_v24 = vld [vmem:[%s766_s3] sm:$0x1]  ;;  %v450_v40 = vunpack.c.0.s8 %v449_v37  ;;  %s664_s3 = smov [#allocation6]  }
  0x23   :  { %562 = vmatpush1.bf16.msra.mxu0 %v561_v33  ;;  %578 = vmatpush3.bf16.msra.mxu1 %v575_v28  ;;  %v296_v33 = vshrl.u32 %v295_v32, 7  ;;  %s482_s23 = sshll.u32 %s664_s3, 4  ;;  %s483_s23 = int_to_ptr.vmem [resolvable:$true] %s482_s23 }
  0x24   :  { %564 = vmatprep.subr.bf16.mxu0 %v563_v35  ;;  %580 = vmatprep.subr.bf16.mxu1 %v579_v39  ;;  %s630_s24 = scalar_lea.vmem %s483_s23, 48  ;;  %s634_s25 = scalar_lea.vmem %s483_s23, 64 }
  0x25   :  { %76 = vperm.xlu0 %606, %v66_v42   ;;  %v297_v38 = vsub.s32 0, %v296_v33  ;;  %p631_p8 = scmp.ne.s32.totalorder %s483_s23, %s630_s24  ;;  %p635_p9 = scmp.lt.s32.totalorder %s483_s23, %s483_s23 }
  0x26   :  { %86 = vperm.xlu1 %607, %v68_v43   ;;  %p636_p10 = scmp.lt.s32.totalorder %s634_s25, %s630_s24 }
  0x27   :  { %566 = vmatpush1.bf16.msra.mxu0 %v565_v41  ;;  %582 = vmatpush3.bf16.msra.mxu1 %v579_v39 }
  0x28   :  { %591 = vmatprep.subr.bf16.mxu0 %v661_v48  ;;  %p637_p11 = por %p636_p10, %p635_p9 }
  0x29   :  { %292 = vperm.xlu0 %606, %v289_v44  }
  0x2a   :  { %491 = vmatmul.mubr.msk.f32.vlgmr.msra.gmra.mrb[0].mxu0 %vm89_vm0, %v37_v34  ;;  %535 = vmatmul.mubr.msk.f32.vlgmr.msra.gmra.mrb[0].mxu1 %vm89_vm0, %v38_v45  ;;  %p638_p12 = pnand %p637_p11, %p631_p8 }
  0x2b   :  { %172 = vmatprep.mubr.f32.mxu0 %v659_v1  ;;  %537 = vmatprep.mubr.msk.f32.mxu1 %vm89_vm0, %v39_v46 }
  0x2e   :  { %492 = vmatmul.mubr.msk.f32.gmra.mrb[2].mxu0 %vm89_vm0, %v38_v45  ;;  %538 = vmatmul.mubr.msk.f32.gmra.mrb[2].mxu1 %vm89_vm0, %v40_v47  ;;  %v453_v45 = vsub.s32 %v450_v40, %v296_v33 }
  0x2f   :  { %178 = vmatprep.mubr.f32.mxu0 %v659_v1  ;;  %367 = vmatprep.mubr.f32.mxu1 %v659_v1 }
  0x32   :  { %493 = vmatmul.mubr.msk.f32.gmra.mrb[4].mxu0 %vm89_vm0, %v39_v46 }
  0x33   :  { %184 = vmatprep.mubr.f32.mxu0 %v659_v1 }
  0x36   :  { %494 = vmatmul.mubr.msk.f32.gmra.mrb[6].mxu0 %vm89_vm0, %v40_v47 }
  0x37   :  { %548 = vmatprep.mubr.msk.f32.mxu0 %vm662_vm1, %v659_v1 }
  0xa0   :  { %v72_v49 = vpop.permute.xlu0 %71 }
  0xa1   :  { %v82_v50 = vpop.permute.xlu1 %81 }
  0xa4   :  { %v77_v51 = vpop.permute.xlu0 %76 }
  0xa5   :  { %v87_v59 = vpop.permute.xlu1 %86 }
  0xa8   :  { %v293_v39 = vpop.permute.xlu0 %292 }
  0xa9   :  { %v298_v41 = vrot.slane %v293_v39, %v297_v38 }
  0xfd   :  { %v168_v52 = vpop.f32.mrb[0].mxu0  ;;  %v536_v53 = vpop.f32.mrb[0].mxu1 }
  0xfe   :  { %v170_v54 = vpop.f32.mrb[1].mxu0  ;;  %v263_v55 = vadd.f32 %v536_v53, %v77_v51  ;;  %v257_v56 = vpop.f32.mrb[1].mxu1  ;;  %v169_v57 = vadd.f32 %v168_v52, %v72_v49 }
  0xff   :  { %v258_v58 = vadd.f32 %v257_v56, %v72_v49  ;;  %v171_v61 = vadd.f32 %v170_v54, %v72_v49 }
 0x100   :  { %v281_v60 = vmax.f32 %v263_v55, 0.0  ;;  %v276_v6 = vmax.f32 %v169_v57, 0.0 }
 0x101   :  { %v174_v62 = vpop.f32.mrb[2].mxu0  ;;  %v278_v63 = vmax.f32 %v258_v58, 0.0  ;;  %v539_v2 = vpop.f32.mrb[2].mxu1  ;;  %v277_v10 = vmax.f32 %v171_v61, 0.0 }
 0x102   :  { %v175_v0 = vadd.f32 %v174_v62, %v77_v51  ;;  %v176_v3 = vpop.f32.mrb[3].mxu0  ;;  %v273_v4 = vadd.f32 %v539_v2, %v87_v59  ;;  %v267_v5 = vpop.f32.mrb[3].mxu1 }
 0x103   :  { %v177_v1 = vadd.f32 %v176_v3, %v77_v51  ;;  %v592_v7 = vpack.c.bf16 %v281_v60, %v278_v63  ;;  %v268_v9 = vadd.f32 %v267_v5, %v82_v50 }
 0x104   :  { %v279_v8 = vmax.f32 %v175_v0, 0.0  ;;  %v287_v11 = vmax.f32 %v273_v4, 0.0 }
 0x105   :  { %v280_v12 = vmax.f32 %v177_v1, 0.0  ;;  %v180_v13 = vpop.f32.mrb[4].mxu0  ;;  %v284_v15 = vmax.f32 %v268_v9, 0.0  ;;  %593 = vmatpush3.bf16.msra.mxu0 %v592_v7 }
 0x106   :  { %v585_v14 = vpack.c.bf16 %v279_v8, %v276_v6  ;;  %v182_v16 = vpop.f32.mrb[5].mxu0  ;;  %594 = vmatprep.subr.bf16.mxu0 %v661_v48  ;;  %v181_v19 = vadd.f32 %v180_v13, %v82_v50 }
 0x107   :  { %v583_v17 = vpack.c.bf16 %v280_v12, %v277_v10  ;;  %v595_v18 = vpack.c.bf16 %v287_v11, %v284_v15  ;;  %v183_v20 = vadd.f32 %v182_v16, %v82_v50 }
 0x108   :  { %v282_v26 = vmax.f32 %v181_v19, 0.0 }
 0x109   :  { %v186_v21 = vpop.f32.mrb[6].mxu0  ;;  %584 = vmatprep.subr.bf16.mxu1 %v583_v17  ;;  %596 = vmatpush3.bf16.msra.mxu0 %v595_v18  ;;  %v283_v28 = vmax.f32 %v183_v20, 0.0 }
 0x10a   :  { %v187_v22 = vadd.f32 %v186_v21, %v87_v59  ;;  %v188_v23 = vpop.f32.mrb[7].mxu0  ;;  %586 = vmatpush1.bf16.msra.mxu1 %v585_v14 }
 0x10b   :  { %v189_v25 = vadd.f32 %v188_v23, %v87_v59 }
 0x10c   :  { %v285_v27 = vmax.f32 %v187_v22, 0.0  ;;  %549 = vmatmul.mubr.msk.f32.vlgmr.msra.gmra.mrb[8].mxu0 %vm299_vm2, %v288_v24 }
 0x10d   :  { %v286_v29 = vmax.f32 %v189_v25, 0.0 }
 0x10e   :  { %v589_v30 = vpack.c.bf16 %v285_v27, %v282_v26 }
 0x10f   :  { %v587_v31 = vpack.c.bf16 %v286_v29, %v283_v28 }
 0x111   :  { %588 = vmatprep.subr.bf16.mxu1 %v587_v31 }
 0x112   :  { %590 = vmatpush1.bf16.msra.mxu1 %v589_v30 }
 0x115   :  { %499 = vmatmul.mubr.msk.f32.vlgmr.msra.gmra.mrb[4].mxu1 %vm299_vm2, %v288_v24 }
 0x1df   :  { %v440_v34 = vpop.f32.mrb[8].mxu0 }
 0x1e0   :  { %v550_v35 = vpop.f32.mrb[9].mxu0  ;;  %v441_v46 = vadd.f32 %v440_v34, %v298_v41 }
 0x1e2   :  { %v461_v49 = vrot.slane %v441_v46, %v453_v45 }
 0x1e8   :  { %v369_v42 = vpop.f32.mrb[4].mxu1 }
 0x1e9   :  { %v370_v43 = vadd.f32 %v369_v42, %v298_v41  ;;  %v371_v44 = vpop.f32.mrb[5].mxu1 }
 0x1ea   :  { %v372_v47 = vadd.f32 %v371_v44, %v298_v41 }
 0x1ec   :  { %v447_v48 = vcombine.low %v370_v43, %v372_v47 }
 0x1ee   :  { %v454_v50 = vrot.slane %v447_v48, %v453_v45 }
 0x1f0   :  { %v462_v51 = vcombine.low %v454_v50, %v461_v49 }
 0x1f2   :  { %v469_v52 = vrot.slane %v462_v51, %v453_v45 }
 0x1f4   :  { %475 = vst.msk [vmem:[#allocation6] sm:$0x7] %vm473_vm3, %v469_v52 }
 0x1f5   :  { %641 = shalt.err (!%p638_p12)
}
 0x1f6   :  { %s642_s28 = scalar_lea.hbm %s768_s5, 48 }
 0x1f7   :  { %p643_p13 = scmp.ne.s32.totalorder %s768_s5, %s642_s28  ;;  %p646_p0 = scmp.lt.u32.totalorder %s642_s28, %s768_s5 }
 0x1f9   :  { %p648_p1 = pnand %p646_p0, %p643_p13 }
 0x1fb   :  { %651 = shalt.err (!%p648_p1)
}
 0x1fc   :  { %485 = dma.vmem_to_hbm [thread:$0]  %s483_s23, 48, %s768_s5, [#allocation5]  }
 0x1fd   :  { %654 = dma.done.wait [#allocation5], 48  }
 0x1fe   :  { %655 = vsyncadd [#allocation5], 4294967248 }
 0x1ff   :  { %489 = vsyncpa [#allocation4], 1 }
 0x200   :  { %490 = vsyncpa [#allocation5], 1 }

</bundles_post_ra>
